<compile_context>
chip_gen: v6e
topology: v6e:2x2x1
jax: 0.10.0
libtpu: 0.0.40
codegen_flags: <defaults>
</compile_context>

<pallas_src>
import jax
import jax.numpy as jnp
from jax.experimental import pallas as pl
from jax.experimental.pallas import tpu as pltpu

EPS = 1e-6
# Input bytes per grid step. 2-4 MiB keeps ~85%+ of the HBM roofline while the
# double-buffered input + block-sized f32 temporaries stay far below v7x's
# 64 MiB physical VMEM.
_TARGET_BLOCK_BYTES = 4 * 1024 * 1024
# >= 8 grid steps (when the batch allows) => >= 4 steps per v7x TensorCore, so
# the software pipeline can hide the first-block DMA / last-block writeback.
_MIN_GRID_STEPS = 8


def _wgemhpp_kernel(p_ref, convw_ref, x_ref, out_ref):
    # p_ref:     SMEM  (1,)           learnable GeM exponent
    # convw_ref: VMEM  (C, 1, 1)      1x1 conv weight (C -> 1, no bias)
    # x_ref:     VMEM  (B, C, H, W)   NCHW block, DMA'd straight from HBM
    # out_ref:   VMEM  (B, C, H)
    p = p_ref[0]
    inv_p = 1.0 / p                                    # scalar, computed once

    x = x_ref[...].astype(jnp.float32)                 # [B, C, H, W]
    w_size = x.shape[-1]
    cw = convw_ref[...].astype(jnp.float32)[None]      # [1, C, 1, 1]

    # --- 1x1 conv (C -> 1): per-channel scale (tile splat) + reduce over the
    # leading C axis (plain vreg adds; no cross-lane work).
    logits = jnp.sum(x * cw, axis=1)                   # [B, H, W]

    # --- softmax over width (lanes), pooling 1/W folded into the normalizer.
    # Lane-dense [B, H, W] vregs; exact reciprocal on the tiny [B, H, 1] denom.
    m = jnp.max(logits, axis=-1, keepdims=True)        # [B, H, 1]
    e = jnp.exp(logits - m)                            # [B, H, W]
    denom = jnp.sum(e, axis=-1, keepdims=True) * float(w_size)
    wgt = e * (1.0 / denom)                            # [B, H, W], sums to 1/W

    # --- weighted generalized-mean pooling over W, in shifted log-domain:
    #   out = ( sum_w clamp(x)^p * wgt )^(1/p)
    #       = exp( (m2 + log(sum_w exp(p*log(clamp(x)) - m2) * wgt)) / p )
    # The m2 shift keeps exp() arguments <= 0, so eps^p never flushes to zero.
    lx = p * jnp.log(jnp.maximum(x, EPS))              # [B, C, H, W]
    m2 = jnp.max(lx, axis=-1, keepdims=True)           # [B, C, H, 1]
    e2 = jnp.exp(lx - m2)                              # [B, C, H, W]
    pooled = jnp.sum(e2 * wgt[:, None, :, :], axis=-1)  # [B, C, H]
    out = jnp.exp((jnp.log(pooled) + m2[..., 0]) * inv_p)
    out_ref[...] = out.astype(out_ref.dtype)


def _pick_batch_block(n, per_image_bytes):
    """Images per grid step: <= ~4 MiB of input and (if possible) >= 8 steps."""
    by_bytes = max(1, _TARGET_BLOCK_BYTES // max(1, per_image_bytes))
    by_steps = max(1, pl.cdiv(n, _MIN_GRID_STEPS))
    return max(1, min(n, by_bytes, by_steps))


@jax.jit
def wgemhpp_forward(x, conv_w, p):
    """x: [n, c, h, w]; conv_w: [1, c]; p: [1]  ->  [n, c, h]."""
    n, c, h, w = x.shape
    conv_w3 = conv_w.reshape(c, 1, 1)        # free metadata reshape (tiny)

    per_image_bytes = c * h * w * x.dtype.itemsize
    b_blk = _pick_batch_block(n, per_image_bytes)
    grid = (pl.cdiv(n, b_blk),)              # ragged last block is fine

    blk_bytes = b_blk * c * h * w * 4        # f32 in-kernel working size
    # Double-buffered input + a few block-sized f32 temporaries, with headroom;
    # capped well under v7x's 64 MiB physical VMEM (fine on v5e/v6e too).
    vmem_limit = int(min(40 * 2**20, max(16 * 2**20, 10 * blk_bytes)))

    return pl.pallas_call(
        _wgemhpp_kernel,
        out_shape=jax.ShapeDtypeStruct((n, c, h), x.dtype),
        grid=grid,
        in_specs=[
            pl.BlockSpec(memory_space=pltpu.MemorySpace.SMEM),       # p
            pl.BlockSpec((c, 1, 1), lambda i: (0, 0, 0)),            # conv w
            pl.BlockSpec((b_blk, c, h, w), lambda i: (i, 0, 0, 0)),  # x (NCHW)
        ],
        out_specs=pl.BlockSpec((b_blk, c, h), lambda i: (i, 0, 0)),
        compiler_params=pltpu.CompilerParams(
            dimension_semantics=("parallel",),
            vmem_limit_bytes=vmem_limit,
        ),
    )(p, conv_w3, x)


def wgemhpp_reference(x, conv_w, p):
    """Pure-JAX reference mirroring the PyTorch module (bin_num = [h])."""
    logits = jnp.einsum("nchw,c->nhw", x, conv_w[0])   # 1x1 conv, C->1
    weight = jax.nn.softmax(logits, axis=-1)[:, None]  # [n,1,h,w]
    xp = jnp.clip(x, EPS, None) ** p[0]
    pooled = jnp.mean(xp * weight, axis=-1)            # avg_pool2d (1, w)
    return pooled ** (1.0 / p[0])                      # [n, c, h]


# TODO(synk): only the bin_num=[h] single-bin configuration is implemented
# (matches the broadcast constraint of the original PyTorch code); the 1x1
# conv is bias-free (a bias would be a no-op anyway: softmax is shift-invariant).

if __name__ == "__main__":
    key = jax.random.PRNGKey(0)
    kx, kw = jax.random.split(key)

    # Small shapes consistent with the module; bin_num = [H] => output v == H.
    N, C, H, W = 2, 4, 16, 16
    x = jax.random.uniform(kx, (N, C, H, W), dtype=jnp.float32,
                           minval=0.0, maxval=1.0)

    # Deterministic synthetic parameters: 1x1 conv weight [1,C,1,1] -> [1, C].
    conv_w = 0.1 * jax.random.normal(kw, (1, C), dtype=jnp.float32)
    p = jnp.full((1,), 6.5, dtype=jnp.float32)         # nn.Parameter(ones(1)*6.5)

    out = wgemhpp_forward(x, conv_w, p)
    jax.block_until_ready(out)

    ref = wgemhpp_reference(x, conv_w, p)
    assert out.shape == (N, C, H), out.shape
    assert jnp.allclose(out, ref, rtol=1e-3, atol=1e-6), "mismatch vs reference"

    print("KERNEL_OK")
</pallas_src>

<mosaic_0001>
module attributes {stable_mosaic.version = 11 : i64} {
  func.func @_wgemhpp_kernel(%arg0: i32, %arg1: memref<1xf32, #tpu.memory_space<smem>>, %arg2: memref<4x1x1xf32, #tpu.memory_space<vmem>>, %arg3: memref<1x4x16x16xf32, #tpu.memory_space<vmem>>, %arg4: memref<1x4x16xf32, #tpu.memory_space<vmem>>) attributes {dimension_semantics = [#tpu.dimension_semantics<parallel>], iteration_bounds = array<i64: 2>, scalar_prefetch = 0 : i64, scratch_operands = 0 : i64, tpu.core_type = #tpu.core_type<tc>, window_params = [{transform_indices = @transform_0, window_bounds = array<i64: 1>}, {pipeline_mode = #tpu.pipeline_mode<synchronous>, transform_indices = @transform_1, window_bounds = array<i64: 4, 1, 1>}, {transform_indices = @transform_2, window_bounds = array<i64: 1, 4, 16, 16>}, {transform_indices = @transform_3, window_bounds = array<i64: 1, 4, 16>}]} {
    %c0 = arith.constant 0 : index
    %0 = memref.load %arg1[%c0] : memref<1xf32, #tpu.memory_space<smem>>
    %cst = arith.constant 1.000000e+00 : f32
    %1 = arith.divf %cst, %0 : f32
    %c0_0 = arith.constant 0 : index
    %c0_1 = arith.constant 0 : index
    %c0_2 = arith.constant 0 : index
    %c0_3 = arith.constant 0 : index
    %2 = vector.load %arg3[%c0_0, %c0_1, %c0_2, %c0_3] : memref<1x4x16x16xf32, #tpu.memory_space<vmem>>, vector<1x4x16x16xf32>
    %c0_4 = arith.constant 0 : index
    %c0_5 = arith.constant 0 : index
    %c0_6 = arith.constant 0 : index
    %3 = vector.load %arg2[%c0_4, %c0_5, %c0_6] : memref<4x1x1xf32, #tpu.memory_space<vmem>>, vector<4x1x1xf32>
    %4 = vector.shape_cast %3 : vector<4x1x1xf32> to vector<1x4x1x1xf32>
    %5 = vector.broadcast %4 : vector<1x4x1x1xf32> to vector<1x4x16x16xf32>
    %6 = arith.mulf %2, %5 : vector<1x4x16x16xf32>
    %cst_7 = arith.constant dense<0.000000e+00> : vector<1x16x16xf32>
    %7 = vector.multi_reduction <add>, %6, %cst_7 [1] : vector<1x4x16x16xf32> to vector<1x16x16xf32>
    %cst_8 = arith.constant dense<0xFF800000> : vector<1x16xf32>
    %8 = vector.multi_reduction <maximumf>, %7, %cst_8 [2] : vector<1x16x16xf32> to vector<1x16xf32>
    %9 = vector.shape_cast %8 : vector<1x16xf32> to vector<1x16x1xf32>
    %10 = vector.broadcast %9 : vector<1x16x1xf32> to vector<1x16x16xf32>
    %11 = arith.subf %7, %10 : vector<1x16x16xf32>
    %12 = math.exp %11 : vector<1x16x16xf32>
    %cst_9 = arith.constant dense<0.000000e+00> : vector<1x16xf32>
    %13 = vector.multi_reduction <add>, %12, %cst_9 [2] : vector<1x16x16xf32> to vector<1x16xf32>
    %14 = vector.shape_cast %13 : vector<1x16xf32> to vector<1x16x1xf32>
    %cst_10 = arith.constant 1.600000e+01 : f32
    %15 = vector.broadcast %cst_10 : f32 to vector<1x16x1xf32>
    %16 = arith.mulf %14, %15 : vector<1x16x1xf32>
    %cst_11 = arith.constant 1.000000e+00 : f32
    %17 = vector.broadcast %cst_11 : f32 to vector<1x16x1xf32>
    %18 = arith.divf %17, %16 : vector<1x16x1xf32>
    %19 = vector.broadcast %18 : vector<1x16x1xf32> to vector<1x16x16xf32>
    %20 = arith.mulf %12, %19 : vector<1x16x16xf32>
    %cst_12 = arith.constant 9.99999997E-7 : f32
    %21 = vector.broadcast %cst_12 : f32 to vector<1x4x16x16xf32>
    %22 = arith.maximumf %2, %21 : vector<1x4x16x16xf32>
    %23 = math.log %22 : vector<1x4x16x16xf32>
    %24 = vector.broadcast %0 : f32 to vector<1x4x16x16xf32>
    %25 = arith.mulf %24, %23 : vector<1x4x16x16xf32>
    %cst_13 = arith.constant dense<0xFF800000> : vector<1x4x16xf32>
    %26 = vector.multi_reduction <maximumf>, %25, %cst_13 [3] : vector<1x4x16x16xf32> to vector<1x4x16xf32>
    %27 = vector.shape_cast %26 : vector<1x4x16xf32> to vector<1x4x16x1xf32>
    %28 = vector.broadcast %27 : vector<1x4x16x1xf32> to vector<1x4x16x16xf32>
    %29 = arith.subf %25, %28 : vector<1x4x16x16xf32>
    %30 = math.exp %29 : vector<1x4x16x16xf32>
    %31 = vector.shape_cast %20 : vector<1x16x16xf32> to vector<1x1x16x16xf32>
    %32 = vector.broadcast %31 : vector<1x1x16x16xf32> to vector<1x4x16x16xf32>
    %33 = arith.mulf %30, %32 : vector<1x4x16x16xf32>
    %cst_14 = arith.constant dense<0.000000e+00> : vector<1x4x16xf32>
    %34 = vector.multi_reduction <add>, %33, %cst_14 [3] : vector<1x4x16x16xf32> to vector<1x4x16xf32>
    %35 = math.log %34 : vector<1x4x16xf32>
    %36 = vector.shape_cast %27 : vector<1x4x16x1xf32> to vector<1x4x16xf32>
    %37 = arith.addf %35, %36 : vector<1x4x16xf32>
    %38 = vector.broadcast %1 : f32 to vector<1x4x16xf32>
    %39 = arith.mulf %37, %38 : vector<1x4x16xf32>
    %40 = math.exp %39 : vector<1x4x16xf32>
    %c0_15 = arith.constant 0 : index
    %c0_16 = arith.constant 0 : index
    %c0_17 = arith.constant 0 : index
    %41 = vector.load %arg4[%c0_15, %c0_16, %c0_17] : memref<1x4x16xf32, #tpu.memory_space<vmem>>, vector<1x4x16xf32>
    tpu.vector_store %arg4[%c0_15, %c0_16, %c0_17], %40 {strides = array<i32>} : memref<1x4x16xf32, #tpu.memory_space<vmem>>, vector<1x4x16xf32>,
    return
  }
  func.func @transform_0(%arg0: i32) -> i32 {
    %c0_i32 = arith.constant 0 : i32
    %c0_i32_0 = arith.constant 0 : i32
    return %c0_i32 : i32
  }
  func.func @transform_1(%arg0: i32) -> (i32, i32, i32) {
    %c0_i32 = arith.constant 0 : i32
    %c0_i32_0 = arith.constant 0 : i32
    %c0_i32_1 = arith.constant 0 : i32
    %c0_i32_2 = arith.constant 0 : i32
    return %c0_i32, %c0_i32_0, %c0_i32_1 : i32, i32, i32
  }
  func.func @transform_2(%arg0: i32) -> (i32, i32, i32, i32) {
    %c0_i32 = arith.constant 0 : i32
    %c0_i32_0 = arith.constant 0 : i32
    %c0_i32_1 = arith.constant 0 : i32
    %c0_i32_2 = arith.constant 0 : i32
    return %arg0, %c0_i32, %c0_i32_0, %c0_i32_1 : i32, i32, i32, i32
  }
  func.func @transform_3(%arg0: i32) -> (i32, i32, i32) {
    %c0_i32 = arith.constant 0 : i32
    %c0_i32_0 = arith.constant 0 : i32
    %c0_i32_1 = arith.constant 0 : i32
    return %arg0, %c0_i32, %c0_i32_0 : i32, i32, i32
  }
}

</mosaic_0001>

<bundles_post_ra>
// kernel: wgemhpp_forward.1
= control target key start
LH: loop header
LB: loop body
LE: loop exit
PB: predicated region body
PF: predicated region fallthrough
CT: control target
= control target key end

     0   :  { %s1100_s0 = inlined_call_operand.<no memory space> [shape: f32[1], index: 0, kind: input, shape index: {}]   ;;  %s1101_s1 = inlined_call_operand.vmem [shape: f32[4,1,1], index: 1, kind: input, shape index: {}]   ;;  %s1102_s2 = inlined_call_operand.hbm [shape: f32[2,4,16,16], index: 2, kind: input, shape index: {}]   ;;  %s1103_s3 = inlined_call_operand.hbm [shape: f32[2,4,16], index: 3, kind: output, shape index: {}]  }
   0x1   :  { %8 = sst [smem:[#allocation2]] %s1100_s0 }
   0x2   :  { %9 = vsyncpa [#allocation4], 0 }
   0x3   :  { %11 = vsyncpa [#allocation4 + $0x1], 0 }
   0x4   :  { %12 = vsyncpa [#allocation5], 0 }
   0x5   :  { %14 = vsyncpa [#allocation5 + $0x1], 0  ;;  %s861_s14 = smov 0   ;;  %s863_s15 = smov 0  }
   0x6   :  { %s865_s16 = smov 0   ;;  %s867_s17 = smov 0  }
   0x7 LB: > { %s882_s0 = sadd.s32 4294967295, %s831_s17   ;;  %s594_s18 = sadd.s32 4294967294, %s831_s17   ;;  %s831_s17 = sphi %s867_s17, %s1118_s17   ;;  %s827_s16 = sphi %s865_s16, %s1117_s16   ;;  %s823_s15 = sphi %s863_s15, %s1116_s15   ;;  %s819_s14 = sphi %s861_s14, %s1115_s14  }
   0x8   : > { %s886_s19 = sadd.s32 1, %s831_s17   ;;  %s69_s20 = sadd.s32 1, %s827_s16 }
   0x9   : > { %s66_s21 = ssub.s32 %s831_s17, %s886_s19  ;;  %p76_p0 = scmp.ne.s32.totalorder %s827_s16, %s823_s15 }
   0xa   : > { %p67_p1 = scmp.eq.s32.totalorder %s66_s21, 0  ;;  %p77_p2 = scmp.eq.s32.totalorder %s831_s17, 0 }
   0xb   : > { %p82_p3 = scmp.ne.s32.totalorder %s823_s15, %s819_s14  ;;  %p83_p4 = scmp.eq.s32.totalorder %s882_s0, 0 }
   0xc   : > { %s898_s22 = scalar_select %p67_p1, %s827_s16, %s69_s20  }
   0xd   : > { %p900_p5 = por %p77_p2, %p76_p0  ;;  %p904_p6 = por %p83_p4, %p82_p3 }
   0xe   : > { %p106_p7 = scmp.eq.s32.totalorder %s882_s0, 1  ;;  %p112_p8 = scmp.eq.s32.totalorder %s594_s18, 1 }
   0xf   : > { %s1107_s24 = scalar_select %p904_p6, 1, 0 }
  0x10   : > { %p626_p10 = scmp.lt.s32.totalorder %s831_s17, 2  ;;  %p911_p11 = por %p106_p7, %p76_p0 }
  0x11   : > { %p915_p12 = por %p112_p8, %p82_p3  ;;  %s138_s27 = sand.u32 1, %s827_s16  }
  0x12   : > { %s1108_s25 = scalar_select %p911_p11, 1, 0 }
  0x13   : > { %s1109_s26 = scalar_select %p915_p12, 1, 0 }
  0x14   : > { %s611_s28 = sshll.u32 %s831_s17, 10  ;;  %s597_s29 = sshll.u32 %s138_s27, 6 }
  0x15   : > { %s924_s5 = scalar_lea.hbm %s1102_s2, %s611_s28  ;;  %s142_s6 = scalar_lea.vmem [#allocation3], %s597_s29 }
  0x16   : > { %s149_s7 = sshll.u32 %s142_s6, 4  ;;  %p928_p13 = pnand %p626_p10, %p900_p5  ;;  %s932_s7 = int_to_ptr.vmem [resolvable:$true] %s149_s7 }
  0x17   : > { %s934_s9 = scalar_lea.sflag [#allocation4], %s138_s27  ;;  %s739_s10 = scalar_lea.hbm %s924_s5, 1024 }
  0x18   : > { %p740_p0 = scmp.ne.s32.totalorder %s924_s5, %s739_s10  ;;  %p741_p1 = pneg %p928_p13 }
  0x19   : > { %s744_s13 = scalar_lea.hbm %s1102_s2, 2048  ;;  %p745_p4 = scmp.lt.s32.totalorder %s924_s5, %s1102_s2 }
  0x1a   : > { %p742_p2 = pnand %p741_p1, %p740_p0  ;;  %p746_p5 = scmp.lt.s32.totalorder %s744_s13, %s739_s10 }
  0x1c   : > { %p743_p3 = pneg %p742_p2  ;;  %p747_p7 = por %p746_p5, %p745_p4 }
  0x1e   : > { %p748_p8 = pnand %p747_p7, %p743_p3 }
  0x20   : > { %751 = shalt.err (!%p748_p8)
}
  0x21   : > { %s752_s21 = scalar_lea.vmem %s932_s7, 1024  ;;  %s833_s23 = smov [#allocation3]  }
  0x22   : > { %p753_p10 = scmp.ne.s32.totalorder %s932_s7, %s752_s21  ;;  %s757_s27 = sshll.u32 %s833_s23, 4  ;;  %s758_s27 = int_to_ptr.vmem [resolvable:$false] %s757_s27 }
  0x23   : > { %s759_s28 = scalar_lea.vmem %s758_s27, 2048  ;;  %p760_p2 = scmp.lt.s32.totalorder %s932_s7, %s758_s27 }
  0x24   : > { %p755_p9 = pnand %p753_p10, %p741_p1  ;;  %p761_p12 = scmp.lt.s32.totalorder %s759_s28, %s752_s21 }
  0x26   : > { %p756_p0 = pneg %p755_p9  ;;  %p762_p11 = por %p761_p12, %p760_p2 }
  0x28   : > { %p763_p6 = pnand %p762_p11, %p756_p0 }
  0x2a   : > { %766 = shalt.err (!%p763_p6)
}
  0x2b   : > { %s834_s29 = smov 128   ;;  %s835_s30 = smov 8  }
  0x2c   : > { %621 = dma.hbm_to_vmem [thread:$0]  (!%p928_p13), %s924_s5, 1024, %s932_s7, %s934_s9, %s834_s29, %s834_s29, %s835_s30  }
  0x2d   : > { %p600_p9 = scmp.ge.s32.totalorder %s831_s17, 1  ;;  %p157_p1 = scmp.lt.s32.totalorder %s831_s17, 3 }
  0x2f   : > { %p158_p3 = pnand %p600_p9, %p157_p1 }
  0x30   : > { %s958_s4 = sand.u32 (!%p158_p3), 1, %s823_s15   ;;  %p1111_p6 = scmp.ne.s32.totalorder (!%p158_p3), %s1107_s24, 0 }
  0x31   : > { %161 = sbr.rel (%p158_p3) target bundleno = 718 (0x2ce), region = 32  ;;  %s601_s6 = sshll.u32 (!%p158_p3), %s958_s4, 6 }
  0x32   : > { %s164_s10 = scalar_lea.sflag (!%p158_p3), [#allocation4], %s958_s4  ;;  %s167_s11 = scalar_lea.vmem (!%p158_p3), [#allocation3], %s601_s6 }
  0x36   : > { %810 = dma.done.wait (%p1111_p6), %s164_s10, 1024  }
  0x37   : > { %812 = vsyncadd (%p1111_p6), %s164_s10, 4294966272  ;;  %v836_v0 = vmov 0   ;;  %v605_v1 = vld [vmem:[%s1101_s1 + $0x2] ss:$0 sm:$0xff]  ;;  %v603_v2 = vld [vmem:[%s1101_s1] ss:$0 sm:$0xff] }
  0x38   : > { %664 = vset.pattern.permute.xlu1 %v836_v0  ;;  %663 = vset.pattern.permute.xlu0 %v836_v0  ;;  %v606_v3 = vld [vmem:[%s1101_s1 + $0x3] ss:$0 sm:$0xff]  ;;  %v604_v4 = vld [vmem:[%s1101_s1 + $0x1] ss:$0 sm:$0xff]  ;;  %v195_v6 = vld [vmem:[%s167_s11 + $0x8] sm:$0xff]  ;;  %vm250_vm0 = vcmask 130048  }
  0x39   : > { %235 = vperm.xlu1 %664, %v605_v1   ;;  %227 = vperm.xlu0 %663, %v603_v2   ;;  %v194_v5 = vld [vmem:[%s167_s11] sm:$0xff]  ;;  %v199_v10 = vld [vmem:[%s167_s11 + $0x28] sm:$0xff]  ;;  %v196_v13 = vld [vmem:[%s167_s11 + $0x10] sm:$0xff]  ;;  %v292_v31 = vmax.f32 %v195_v6, 1e-06  ;;  %s190_s20 = sld [smem:[#allocation2]] }
  0x3a   : > { %v198_v9 = vld [vmem:[%s167_s11 + $0x20] sm:$0xff]  ;;  %v197_v14 = vld [vmem:[%s167_s11 + $0x18] sm:$0xff]  ;;  %v200_v16 = vld [vmem:[%s167_s11 + $0x30] sm:$0xff]  ;;  %v291_v26 = vmax.f32 %v194_v5, 1e-06  ;;  %s602_s23 = sshll.u32 %s958_s4, 2 }
  0x3b   : > { %v978_v17 = vld [vmem:[%s167_s11 + $0x38] sm:$0xff]  ;;  %v295_v23 = vmax.f32 %v198_v9, 1e-06  ;;  %v293_v36 = vmax.f32 %v196_v13, 1e-06  ;;  %vm472_vm1 = vcmask 130112  }
  0x3c   : > { %v294_v37 = vmax.f32 %v197_v14, 1e-06  ;;  %v296_v40 = vmax.f32 %v199_v10, 1e-06  ;;  %v297_v47 = vmax.f32 %v200_v16, 1e-06 }
  0x3d   : > { %239 = vperm.xlu1 %664, %v606_v3   ;;  %231 = vperm.xlu0 %663, %v604_v4   ;;  %665 = vlog2.f32 %v295_v23  ;;  %vm501_vm2 = vcmask 1041409   ;;  %vm503_vm3 = vcmask 1042434   ;;  %s608_s27 = sshll.u32 %s882_s0, 6  ;;  %s189_s28 = scalar_lea.vmem [#allocation6], %s602_s23  ;;  %vm505_vm4 = vcmask 1043459  }
  0x3e   : > { %667 = vlog2.f32 %v291_v26  ;;  %s524_s29 = sshll.u32 %s189_s28, 4  ;;  %vm508_vm5 = vcmask 125952   ;;  %s1063_s10 = scalar_lea.hbm %s1103_s3, %s608_s27  ;;  %s525_s29 = int_to_ptr.vmem [resolvable:$true] %s524_s29 }
  0x3f   : > { %669 = vlog2.f32 %v292_v31  ;;  %v191_v56 = vstv %s190_s20  ;;  %s511_s0 = scalar_lea.sflag [#allocation5], %s958_s4  ;;  %s767_s11 = scalar_lea.vmem %s525_s29, 64 }
  0x40   : > { %671 = vlog2.f32 %v293_v36  ;;  %p768_p11 = scmp.ne.s32.totalorder %s525_s29, %s767_s11  ;;  %p1112_p12 = scmp.ne.s32.totalorder %s1108_s25, 0 }
  0x41   : > { %673 = vlog2.f32 %v294_v37  ;;  %s837_s5 = smov [#allocation6]  }
  0x42   : > { %675 = vlog2.f32 %v296_v40  ;;  %p769_p13 = pnand %p768_p11, %p1112_p12  ;;  %s771_s7 = sshll.u32 %s837_s5, 4  ;;  %s772_s7 = int_to_ptr.vmem [resolvable:$false] %s771_s7 }
  0x43   : > { %677 = vlog2.f32 %v297_v47  ;;  %s773_s8 = scalar_lea.vmem %s772_s7, 128  ;;  %p774_p5 = scmp.lt.s32.totalorder %s525_s29, %s772_s7 }
  0x44   : > { %p770_p4 = pneg %p769_p13  ;;  %p775_p7 = scmp.lt.s32.totalorder %s773_s8, %s767_s11 }
  0x46   : > { %p776_p8 = por %p775_p7, %p774_p5 }
  0x48   : > { %p777_p10 = pnand %p776_p8, %p770_p4 }
  0x4a   : > { %v666_v48 = vpop.eup %665 }
  0x4b   : > { %v668_v49 = vpop.eup %667  ;;  %v308_v62 = vmul.f32 0.6931472, %v666_v48 }
  0x4c   : > { %v670_v50 = vpop.eup %669  ;;  %v300_v55 = vmul.f32 0.6931472, %v668_v49 }
  0x4d   : > { %v672_v51 = vpop.eup %671  ;;  %v302_v54 = vmul.f32 0.6931472, %v670_v50 }
  0x4e   : > { %v674_v52 = vpop.eup %673  ;;  %v316_v58 = vmul.f32 %v300_v55, %v191_v56  ;;  %v304_v60 = vmul.f32 0.6931472, %v672_v51 }
  0x4f   : > { %v676_v53 = vpop.eup %675  ;;  %v991_v57 = vmul.f32 %v302_v54, %v191_v56  ;;  %v306_v59 = vmul.f32 0.6931472, %v674_v52 }
  0x50   : > { %v310_v61 = vmul.f32 0.6931472, %v676_v53  ;;  %v324_v0 = vsel %vm250_vm0, %v316_v58, -inf  ;;  %v318_v2 = vmul.f32 %v304_v60, %v191_v56 }
  0x51   : > { %v327_v63 = vsel %vm250_vm0, %v991_v57, -inf  ;;  %v996_v1 = vmul.f32 %v306_v59, %v191_v56 }
  0x52   : > { %v330_v4 = vsel %vm250_vm0, %v318_v2, -inf }
  0x53   : > { %v333_v3 = vsel %vm250_vm0, %v996_v1, -inf }
  0xb4   : > { %v236_v7 = vpop.permute.xlu1 %235  ;;  %v228_v8 = vpop.permute.xlu0 %227 }
  0xb5   : > { %v242_v11 = vmul.f32 %v228_v8, %v194_v5  ;;  %v243_v12 = vmul.f32 %v228_v8, %v195_v6  ;;  %v246_v19 = vmul.f32 %v236_v7, %v198_v9  ;;  %v247_v20 = vmul.f32 %v236_v7, %v199_v10  ;;  %v678_v7 = vpop.eup %677 }
  0xb6   : > { %v1001_v5 = vmul.f32 %v310_v61, %v191_v56  ;;  %v320_v6 = vmul.f32 %v308_v62, %v191_v56  ;;  %v312_v10 = vmul.f32 0.6931472, %v678_v7 }
  0xb7   : > { %v251_v24 = vsel %vm250_vm0, %v242_v11, 0.0  ;;  %v258_v25 = vsel %vm250_vm0, %v243_v12, 0.0  ;;  %v254_v34 = vsel %vm250_vm0, %v246_v19, 0.0  ;;  %v261_v35 = vsel %vm250_vm0, %v247_v20, 0.0 }
  0xb8   : > { %v240_v15 = vpop.permute.xlu1 %239  ;;  %v232_v18 = vpop.permute.xlu0 %231  ;;  %v339_v8 = vsel %vm250_vm0, %v1001_v5, -inf  ;;  %v336_v9 = vsel %vm250_vm0, %v320_v6, -inf  ;;  %v322_v11 = vmul.f32 %v312_v10, %v191_v56 }
  0xb9   : > { %v244_v21 = vmul.f32 %v232_v18, %v196_v13  ;;  %v245_v22 = vmul.f32 %v232_v18, %v197_v14  ;;  %v248_v27 = vmul.f32 %v240_v15, %v200_v16  ;;  %v249_v28 = vmul.f32 %v240_v15, %v978_v17 }
  0xba   : > { %v342_v12 = vsel %vm250_vm0, %v322_v11, -inf  ;;  %v298_v13 = vmax.f32 %v978_v17, 1e-06 }
  0xbb   : > { %v252_v29 = vsel %vm250_vm0, %v244_v21, 0.0  ;;  %v259_v30 = vsel %vm250_vm0, %v245_v22, 0.0  ;;  %v263_v41 = vsel %vm250_vm0, %v249_v28, 0.0  ;;  %v256_v42 = vsel %vm250_vm0, %v248_v27, 0.0 }
  0xbc   : > { %v253_v32 = vadd.f32 %v252_v29, %v251_v24  ;;  %v260_v33 = vadd.f32 %v259_v30, %v258_v25  ;;  %679 = vlog2.f32 %v298_v13 }
  0xbe   : > { %v262_v38 = vadd.f32 %v261_v35, %v260_v33  ;;  %v255_v39 = vadd.f32 %v254_v34, %v253_v32 }
  0xc0   : > { %v264_v43 = vadd.f32 %v263_v41, %v262_v38  ;;  %v257_v44 = vadd.f32 %v256_v42, %v255_v39 }
  0xc2   : > { %v268_v45 = vsel %vm250_vm0, %v264_v43, -inf  ;;  %v265_v46 = vsel %vm250_vm0, %v257_v44, -inf }
  0xc3   : > { %269 = vmax.xlane.f32.xlu1 %v268_v45  ;;  %266 = vmax.xlane.f32.xlu0 %v265_v46 }
  0xc7   : > { %328 = vmax.xlane.f32.xlu0 %v327_v63  ;;  %325 = vmax.xlane.f32.xlu1 %v324_v0 }
  0xc9   : > { %v680_v21 = vpop.eup %679 }
  0xca   : > { %v314_v22 = vmul.f32 0.6931472, %v680_v21 }
  0xcb   : > { %334 = vmax.xlane.f32.xlu0 %v333_v3  ;;  %331 = vmax.xlane.f32.xlu1 %v330_v4 }
  0xcc   : > { %v323_v26 = vmul.f32 %v314_v22, %v191_v56 }
  0xce   : > { %v345_v17 = vsel %vm250_vm0, %v323_v26, -inf }
  0xcf   : > { %340 = vmax.xlane.f32.xlu0 %v339_v8  ;;  %337 = vmax.xlane.f32.xlu1 %v336_v9 }
  0xd3   : > { %343 = vmax.xlane.f32.xlu1 %v342_v12 }
 0x14c   : > { %v270_v14 = vpop.xlane.xlu1 %269  ;;  %v267_v15 = vpop.xlane.xlu0 %266 }
 0x14d   : > { %v272_v16 = vsub.f32 %v264_v43, %v270_v14  ;;  %v271_v18 = vsub.f32 %v257_v44, %v267_v15 }
 0x14f   : > { %v273_v19 = vmul.f32 1.442695, %v271_v18  ;;  %v275_v20 = vmul.f32 1.442695, %v272_v16 }
 0x150   : > { %v1011_v29 = vpop.xlane.xlu0 %328  ;;  %v1013_v30 = vpop.xlane.xlu1 %325 }
 0x151   : > { %681 = vpow2.f32 %v273_v19  ;;  %v348_v33 = vsub.f32 %v316_v58, %v1013_v30  ;;  %v349_v38 = vsub.f32 %v991_v57, %v1011_v29 }
 0x152   : > { %683 = vpow2.f32 %v275_v20 }
 0x153   : > { %685 = vrcp.f32 %v191_v56  ;;  %v356_v37 = vmul.f32 1.442695, %v348_v33  ;;  %v358_v45 = vmul.f32 1.442695, %v349_v38 }
 0x154   : > { %v1015_v31 = vpop.xlane.xlu0 %334  ;;  %v1017_v32 = vpop.xlane.xlu1 %331 }
 0x155   : > { %v350_v36 = vsub.f32 %v318_v2, %v1017_v32  ;;  %687 = vpow2.f32 %v356_v37  ;;  %v351_v44 = vsub.f32 %v996_v1, %v1015_v31 }
 0x157   : > { %v360_v40 = vmul.f32 1.442695, %v350_v36  ;;  %v362_v50 = vmul.f32 1.442695, %v351_v44 }
 0x158   : > { %v1020_v34 = vpop.xlane.xlu0 %340  ;;  %v1022_v35 = vpop.xlane.xlu1 %337 }
 0x159   : > { %v352_v41 = vsub.f32 %v320_v6, %v1022_v35  ;;  %v353_v51 = vsub.f32 %v1001_v5, %v1020_v34 }
 0x15b   : > { %v364_v47 = vmul.f32 1.442695, %v352_v41  ;;  %v366_v55 = vmul.f32 1.442695, %v353_v51 }
 0x15c   : > { %v1028_v43 = vpop.xlane.xlu1 %343 }
 0x15d   : > { %v354_v48 = vsub.f32 %v322_v11, %v1028_v43 }
 0x15e   : > { %v682_v23 = vpop.eup %681 }
 0x15f   : > { %v277_v24 = vsel %vm250_vm0, %v682_v23, 0.0  ;;  %v684_v25 = vpop.eup %683  ;;  %v368_v53 = vmul.f32 1.442695, %v354_v48 }
 0x160   : > { %278 = vadd.xlane.f32.xlu0 %v277_v24  ;;  %v280_v27 = vsel %vm250_vm0, %v684_v25, 0.0  ;;  %v686_v28 = vpop.eup %685 }
 0x161   : > { %612 = vpush %v686_v28 }
 0x162   : > { %v688_v57 = vpop.eup %687 }
 0x164   : > { %281 = vadd.xlane.f32.xlu0 %v280_v27 }
 0x168   : > { %346 = vmax.xlane.f32.xlu0 %v345_v17 }
 0x192   : > { %s613_s21 = spop %612 }
 0x193   : > { %v428_v41 = vstv %s613_s21 }
 0x1e9   : > { %v279_v39 = vpop.xlane.xlu0 %278 }
 0x1ea   : > { %v283_v42 = vmul.f32 16.0, %v279_v39 }
 0x1ec   : > { %689 = vrcp.f32 %v283_v42 }
 0x1ed   : > { %v282_v46 = vpop.xlane.xlu0 %281  ;;  %691 = vpow2.f32 %v360_v40 }
 0x1ee   : > { %v284_v49 = vmul.f32 16.0, %v282_v46 }
 0x1f0   : > { %693 = vrcp.f32 %v284_v49 }
 0x1f1   : > { %695 = vpow2.f32 %v358_v45  ;;  %v1035_v52 = vpop.xlane.xlu0 %346 }
 0x1f2   : > { %697 = vpow2.f32 %v364_v47  ;;  %v355_v54 = vsub.f32 %v323_v26, %v1035_v52 }
 0x1f3   : > { %699 = vpow2.f32 %v362_v50 }
 0x1f4   : > { %701 = vpow2.f32 %v368_v53  ;;  %v370_v56 = vmul.f32 1.442695, %v355_v54 }
 0x1f5   : > { %703 = vpow2.f32 %v366_v55 }
 0x1f6   : > { %705 = vpow2.f32 %v370_v56 }
 0x1f9   : > { %v690_v58 = vpop.eup %689 }
 0x1fa   : > { %v289_v59 = vmul.f32 %v690_v58, %v682_v23  ;;  %v692_v60 = vpop.eup %691 }
 0x1fc   : > { %v372_v61 = vmul.f32 %v688_v57, %v289_v59  ;;  %v374_v2 = vmul.f32 %v692_v60, %v289_v59 }
 0x1fd   : > { %v694_v62 = vpop.eup %693 }
 0x1fe   : > { %v696_v63 = vpop.eup %695  ;;  %v380_v0 = vsel %vm250_vm0, %v372_v61, 0.0  ;;  %v290_v1 = vmul.f32 %v694_v62, %v684_v25  ;;  %v386_v7 = vsel %vm250_vm0, %v374_v2, 0.0 }
 0x1ff   : > { %v698_v3 = vpop.eup %697  ;;  %381 = vadd.xlane.f32.xlu1 %v380_v0 }
 0x200   : > { %v373_v4 = vmul.f32 %v696_v63, %v290_v1  ;;  %v700_v5 = vpop.eup %699  ;;  %v376_v9 = vmul.f32 %v698_v3, %v289_v59 }
 0x201   : > { %v375_v8 = vmul.f32 %v700_v5, %v290_v1  ;;  %v702_v10 = vpop.eup %701 }
 0x202   : > { %v383_v6 = vsel %vm250_vm0, %v373_v4, 0.0  ;;  %v704_v11 = vpop.eup %703  ;;  %v392_v13 = vsel %vm250_vm0, %v376_v9, 0.0  ;;  %v378_v15 = vmul.f32 %v702_v10, %v289_v59 }
 0x203   : > { %384 = vadd.xlane.f32.xlu0 %v383_v6  ;;  %387 = vadd.xlane.f32.xlu1 %v386_v7  ;;  %v389_v12 = vsel %vm250_vm0, %v375_v8, 0.0  ;;  %v377_v14 = vmul.f32 %v704_v11, %v290_v1  ;;  %v706_v16 = vpop.eup %705  ;;  %v461_v7 = vlaneseq }
 0x204   : > { %v398_v19 = vsel %vm250_vm0, %v378_v15, 0.0  ;;  %v379_v20 = vmul.f32 %v706_v16, %v290_v1 }
 0x205   : > { %v395_v18 = vsel %vm250_vm0, %v377_v14, 0.0  ;;  %v464_v11 = vshrl.u32 %v461_v7, 7 }
 0x206   : > { %v401_v21 = vsel %vm250_vm0, %v379_v20, 0.0 }
 0x207   : > { %390 = vadd.xlane.f32.xlu0 %v389_v12  ;;  %393 = vadd.xlane.f32.xlu1 %v392_v13 }
 0x20b   : > { %396 = vadd.xlane.f32.xlu0 %v395_v18  ;;  %399 = vadd.xlane.f32.xlu1 %v398_v19 }
 0x20f   : > { %402 = vadd.xlane.f32.xlu0 %v401_v21 }
 0x288   : > { %v382_v22 = vpop.xlane.xlu1 %381 }
 0x289   : > { %707 = vlog2.f32 %v382_v22 }
 0x28c   : > { %v385_v23 = vpop.xlane.xlu0 %384  ;;  %v388_v24 = vpop.xlane.xlu1 %387 }
 0x28d   : > { %709 = vlog2.f32 %v385_v23 }
 0x28e   : > { %711 = vlog2.f32 %v388_v24 }
 0x290   : > { %v391_v25 = vpop.xlane.xlu0 %390  ;;  %v394_v26 = vpop.xlane.xlu1 %393 }
 0x291   : > { %713 = vlog2.f32 %v391_v25 }
 0x292   : > { %715 = vlog2.f32 %v394_v26 }
 0x294   : > { %v397_v27 = vpop.xlane.xlu0 %396  ;;  %v400_v17 = vpop.xlane.xlu1 %399 }
 0x295   : > { %717 = vlog2.f32 %v397_v27 }
 0x296   : > { %v708_v28 = vpop.eup %707  ;;  %719 = vlog2.f32 %v400_v17 }
 0x297   : > { %v405_v33 = vmul.f32 0.6931472, %v708_v28 }
 0x298   : > { %v403_v36 = vpop.xlane.xlu0 %402 }
 0x299   : > { %721 = vlog2.f32 %v403_v36  ;;  %v420_v38 = vadd.f32 %v405_v33, %v1013_v30 }
 0x29a   : > { %v710_v37 = vpop.eup %709 }
 0x29b   : > { %v712_v39 = vpop.eup %711  ;;  %v407_v40 = vmul.f32 0.6931472, %v710_v37  ;;  %v429_v47 = vmul.f32 %v428_v41, %v420_v38 }
 0x29c   : > { %v409_v42 = vmul.f32 0.6931472, %v712_v39 }
 0x29d   : > { %v421_v44 = vadd.f32 %v407_v40, %v1011_v29  ;;  %v437_v56 = vmul.f32 1.442695, %v429_v47 }
 0x29e   : > { %v714_v45 = vpop.eup %713  ;;  %v422_v46 = vadd.f32 %v409_v42, %v1017_v32 }
 0x29f   : > { %v716_v48 = vpop.eup %715  ;;  %v411_v49 = vmul.f32 0.6931472, %v714_v45  ;;  %v430_v51 = vmul.f32 %v428_v41, %v421_v44  ;;  %723 = vpow2.f32 %v437_v56 }
 0x2a0   : > { %v413_v50 = vmul.f32 0.6931472, %v716_v48  ;;  %v431_v54 = vmul.f32 %v428_v41, %v422_v46 }
 0x2a1   : > { %v423_v53 = vadd.f32 %v411_v49, %v1015_v31  ;;  %v439_v61 = vmul.f32 1.442695, %v430_v51 }
 0x2a2   : > { %v718_v55 = vpop.eup %717  ;;  %v424_v30 = vadd.f32 %v413_v50, %v1022_v35  ;;  %v441_v62 = vmul.f32 1.442695, %v431_v54 }
 0x2a3   : > { %v720_v57 = vpop.eup %719  ;;  %v415_v58 = vmul.f32 0.6931472, %v718_v55  ;;  %v432_v59 = vmul.f32 %v428_v41, %v423_v53 }
 0x2a4   : > { %v417_v60 = vmul.f32 0.6931472, %v720_v57  ;;  %v433_v29 = vmul.f32 %v428_v41, %v424_v30 }
 0x2a5   : > { %v425_v32 = vadd.f32 %v415_v58, %v1020_v34  ;;  %v443_v63 = vmul.f32 1.442695, %v432_v59 }
 0x2a6   : > { %v722_v0 = vpop.eup %721  ;;  %v426_v1 = vadd.f32 %v417_v60, %v1028_v43  ;;  %v445_v31 = vmul.f32 1.442695, %v433_v29  ;;  %v462_v43 = vand.u32 127, %v461_v7 }
 0x2a7   : > { %v419_v2 = vmul.f32 0.6931472, %v722_v0  ;;  %v434_v3 = vmul.f32 %v428_v41, %v425_v32  ;;  %725 = vpow2.f32 %v443_v63 }
 0x2a8   : > { %v435_v35 = vmul.f32 %v428_v41, %v426_v1  ;;  %727 = vpow2.f32 %v439_v61  ;;  %v467_v9 = vadd.s32 4294967288, %v462_v43  ;;  %v465_v16 = vsub.s32 %v462_v43, %v464_v11 }
 0x2a9   : > { %v427_v4 = vadd.f32 %v419_v2, %v1035_v52  ;;  %729 = vpow2.f32 %v441_v62  ;;  %v447_v5 = vmul.f32 1.442695, %v434_v3 }
 0x2aa   : > { %731 = vpow2.f32 %v445_v31  ;;  %v449_v6 = vmul.f32 1.442695, %v435_v35  ;;  %v470_v14 = vsub.s32 %v467_v9, %v464_v11 }
 0x2ab   : > { %v436_v34 = vmul.f32 %v428_v41, %v427_v4  ;;  %733 = vpow2.f32 %v447_v5 }
 0x2ac   : > { %735 = vpow2.f32 %v449_v6  ;;  %v724_v10 = vpop.eup %723 }
 0x2ad   : > { %v451_v8 = vmul.f32 1.442695, %v436_v34  ;;  %v466_v25 = vrot.slane %v724_v10, %v465_v16 }
 0x2af   : > { %737 = vpow2.f32 %v451_v8 }
 0x2b4   : > { %v726_v12 = vpop.eup %725 }
 0x2b5   : > { %v728_v13 = vpop.eup %727  ;;  %v481_v18 = vrot.slane %v726_v12, %v470_v14 }
 0x2b6   : > { %v730_v15 = vpop.eup %729  ;;  %v471_v20 = vrot.slane %v728_v13, %v470_v14 }
 0x2b7   : > { %v732_v52 = vpop.eup %731  ;;  %v477_v21 = vrot.slane %v730_v15, %v465_v16 }
 0x2b8   : > { %v734_v19 = vpop.eup %733  ;;  %v486_v24 = vrot.slane %v732_v52, %v465_v16  ;;  %v473_v28 = vsel %vm472_vm1, %v471_v20, %v466_v25 }
 0x2b9   : > { %v490_v22 = vrot.slane %v734_v19, %v470_v14  ;;  %v736_v23 = vpop.eup %735  ;;  %v482_v26 = vsel %vm472_vm1, %v481_v18, %v477_v21 }
 0x2ba   : > { %v495_v33 = vrot.slane %v736_v23, %v465_v16  ;;  %v502_v37 = vsel %vm501_vm2, %v482_v26, %v473_v28 }
 0x2bb   : > { %v491_v17 = vsel %vm472_vm1, %v490_v22, %v486_v24 }
 0x2bc   : > { %v738_v27 = vpop.eup %737  ;;  %v504_v39 = vsel %vm503_vm3, %v491_v17, %v502_v37 }
 0x2bd   : > { %v499_v36 = vrot.slane %v738_v27, %v470_v14 }
 0x2bf   : > { %v500_v38 = vsel %vm472_vm1, %v499_v36, %v495_v33 }
 0x2c0   : > { %v506_v40 = vsel %vm505_vm4, %v500_v38, %v504_v39 }
 0x2c1   : > { %509 = vst.msk [vmem:[%s189_s28] sm:$0xf] %vm508_vm5, %v506_v40 }
 0x2c2   : > { %780 = shalt.err (!%p777_p10)
}
 0x2c3   : > { %s781_s9 = scalar_lea.hbm %s1063_s10, 64  ;;  %s785_s13 = scalar_lea.hbm %s1103_s3, 128 }
 0x2c4   : > { %p782_p0 = scmp.ne.s32.totalorder %s1063_s10, %s781_s9  ;;  %p786_p1 = scmp.lt.s32.totalorder %s1063_s10, %s1103_s3 }
 0x2c5   : > { %p787_p3 = scmp.lt.s32.totalorder %s785_s13, %s781_s9 }
 0x2c6   : > { %p783_p2 = pnand %p782_p0, %p1112_p12 }
 0x2c7   : > { %p788_p6 = por %p787_p3, %p786_p1 }
 0x2c8   : > { %p784_p9 = pneg %p783_p2 }
 0x2ca   : > { %p789_p11 = pnand %p788_p6, %p784_p9 }
 0x2cc   : > { %792 = shalt.err (!%p789_p11)
}
 0x2cd   : > { %616 = dma.vmem_to_hbm [thread:$0]  (%p1112_p12), %s525_s29, 64, %s1063_s10, %s511_s0  }
 0x2ce PF: > { %s536_s20 = sand.u32 1, %s819_s14   ;;  %p1113_p13 = scmp.ne.s32.totalorder %s1109_s26, 0 }
 0x2cf   : > { %p1114_p4 = scmp.ge.s32.totalorder %s831_s17, 2  ;;  %s537_s21 = scalar_lea.sflag [#allocation5], %s536_s20 }
 0x2d1   : > { %p623_p5 = pnand %p1114_p4, %p1113_p13 }
 0x2d3   : > { %p624_p7 = pneg %p623_p5 }
 0x2d5   : > { %814 = dma.done.wait (%p624_p7), %s537_s21, 64  }
 0x2d6   : > { %816 = vsyncadd (%p624_p7), %s537_s21, 4294967232  ;;  %p17_p8 = scmp.ge.s32.totalorder %s886_s19, 4   ;;  %s1115_s14 = smov %s823_s15 }
 0x2d7   : > { %s1116_s15 = smov %s827_s16  ;;  %s1117_s16 = smov %s898_s22 }
 0x2d8   : > { %s1118_s17 = smov %s886_s19  ;;  %19 = sbr.rel (!%p17_p8) target bundleno = 7 (0x7), region = 77 }
 0x2dd   :  { %542 = vsyncpa [#allocation4], 1 }
 0x2de   :  { %544 = vsyncpa [#allocation4 + $0x1], 1 }
 0x2df   :  { %545 = vsyncpa [#allocation5], 1 }
 0x2e0   :  { %547 = vsyncpa [#allocation5 + $0x1], 1 }

</bundles_post_ra>
